<compile_context>
chip_gen: v7x
topology: tpu7x:2x2x1
jax: 0.10.0
libtpu: 0.0.40
codegen_flags: <defaults>
</compile_context>

<pallas_src>
import jax
import jax.numpy as jnp
from jax.experimental import pallas as pl
from jax.experimental.pallas import tpu as pltpu


def _mish_kernel(x_ref, o_ref):
    x = x_ref[...].astype(jnp.float32)
    # tanh(softplus(x)) = (v^2-1)/(v^2+1) with v = 1+e^x  ->  u/(u+2),
    # u = t*(t+2), t = exp(min(x, 20)).  Clamp at 20 matches PyTorch's
    # F.softplus threshold; exp underflow for very negative x gives 0.
    t = jnp.exp(jnp.minimum(x, 20.0))
    u = t * (t + 2.0)
    d = u + 2.0
    r = pl.reciprocal(d, approx=True)   # EUP approx vrcp (free slot)
    r = r * (2.0 - d * r)               # one Newton step on the VPU -> ~f32 accurate
    o_ref[...] = (x * u * r).astype(o_ref.dtype)


def _mish_jnp(x):
    """Reference-quality jnp Mish (used only for the <128-element ragged tail)."""
    xf = x.astype(jnp.float32)
    sp = jnp.where(xf > 20.0, xf, jnp.log1p(jnp.exp(jnp.minimum(xf, 20.0))))
    return (xf * jnp.tanh(sp)).astype(x.dtype)


def _dimension_semantics():
    # CORE_PARALLEL only changes codegen on multi-TensorCore chips (v7x);
    # keep the proven "parallel" path everywhere else.
    try:
        kind = jax.devices()[0].device_kind.lower()
    except Exception:
        kind = ""
    if "v7" in kind or "7x" in kind:
        return (pltpu.CORE_PARALLEL,)
    return ("parallel",)


def _run_slab(slab, tile_rows, *, donate):
    rows, lanes = slab.shape
    dtype = slab.dtype
    itemsize = jnp.dtype(dtype).itemsize
    n = rows * lanes
    grid = (pl.cdiv(rows, tile_rows),)  # ragged last block handled as masked edge block
    tile_bytes = tile_rows * lanes * itemsize
    # in + out, double-buffered = 4 * tile_bytes; ask for that plus margin,
    # capped at 48 MiB (headroom under v7x's 64 MiB physical VMEM).
    vmem_limit = int(min(48 * 1024 * 1024, max(32 * 1024 * 1024, 5 * tile_bytes)))
    cost = pl.CostEstimate(
        flops=8 * n,
        transcendentals=2 * n,          # exp + reciprocal
        bytes_accessed=2 * n * itemsize,
    )

    def build(dim_sem):
        return pl.pallas_call(
            _mish_kernel,
            out_shape=jax.ShapeDtypeStruct((rows, lanes), dtype),
            grid_spec=pltpu.PrefetchScalarGridSpec(
                num_scalar_prefetch=0,
                grid=grid,
                in_specs=[pl.BlockSpec((tile_rows, lanes), lambda i: (i, 0))],
                out_specs=pl.BlockSpec((tile_rows, lanes), lambda i: (i, 0)),
            ),
            compiler_params=pltpu.CompilerParams(
                dimension_semantics=dim_sem,
                vmem_limit_bytes=vmem_limit,
            ),
            cost_estimate=cost,
            input_output_aliases=({0: 0} if donate else {}),
        )

    dim_sem = _dimension_semantics()
    try:
        return build(dim_sem)(slab)
    except Exception:
        if dim_sem == ("parallel",):
            raise
        # CORE_PARALLEL unsupported on this chip/config: fall back.
        return build(("parallel",))(slab)


def mish(x, *, block_bytes=4 * 1024 * 1024, donate_input=False):
    """Mish activation, elementwise, any shape / floating dtype.

    donate_input=True adds input_output_aliases={0: 0}; only a true in-place
    write when the caller donates x (e.g. under jit with donate_argnums).
    """
    orig_shape = x.shape
    dtype = x.dtype
    n = x.size
    if n == 0:
        return x

    lanes = 128
    itemsize = jnp.dtype(dtype).itemsize
    bits = itemsize * 8
    # Minimum sublane tile per dtype packing: 8 (f32), 16 (bf16/f16), 32 (8-bit).
    sublane_min = max(8, (32 // bits) * 8)

    flat = x.reshape(-1)
    prefix = (n // lanes) * lanes       # 128-aligned prefix -> kernel
    tail = n - prefix                   # < 128 elements    -> trivial jnp

    out_parts = []
    if prefix:
        rows = prefix // lanes
        tile_rows = max(
            sublane_min,
            (block_bytes // (lanes * itemsize)) // sublane_min * sublane_min)
        if rows <= tile_rows:
            tile_rows = rows            # single full-extent block
        slab = (flat[:prefix] if tail else flat).reshape(rows, lanes)
        out_slab = _run_slab(slab, tile_rows, donate=donate_input)
        out_parts.append(out_slab.reshape(-1))
    if tail:
        out_parts.append(_mish_jnp(flat[prefix:]))

    out_flat = out_parts[0] if len(out_parts) == 1 else jnp.concatenate(out_parts)
    return out_flat.reshape(orig_shape)


def _mish_ref(x):
    # Exact PyTorch semantics: x * tanh(F.softplus(x)), softplus threshold 20.
    xf = x.astype(jnp.float32)
    sp = jnp.where(xf > 20.0, xf, jnp.log1p(jnp.exp(jnp.minimum(xf, 20.0))))
    return xf * jnp.tanh(sp)


if __name__ == "__main__":
    key = jax.random.PRNGKey(0)

    # NCHW, like a PyTorch conv feature map: batch=2, channels=4, spatial=16x16.
    x = jax.random.normal(key, (2, 4, 16, 16), dtype=jnp.float32) * 3.0
    y = mish(x)
    jax.block_until_ready(y)
    y_ref = _mish_ref(x)
    assert y.shape == x.shape and y.dtype == x.dtype
    assert jnp.allclose(y, y_ref, atol=1e-3, rtol=1e-3), \
        float(jnp.max(jnp.abs(y - y_ref)))

    # Fully ragged size (< 128 elements -> pure jnp tail path).
    x2 = jax.random.normal(jax.random.PRNGKey(0), (3, 5, 7), dtype=jnp.float32) * 3.0
    y2 = mish(x2)
    jax.block_until_ready(y2)
    assert y2.shape == x2.shape
    assert jnp.allclose(y2, _mish_ref(x2), atol=1e-3, rtol=1e-3)

    # Mixed prefix + tail (exercises aligned-prefix kernel + jnp tail + concat).
    x4 = jax.random.normal(jax.random.PRNGKey(0), (5, 130), dtype=jnp.float32) * 3.0
    y4 = mish(x4)
    jax.block_until_ready(y4)
    assert y4.shape == x4.shape
    assert jnp.allclose(y4, _mish_ref(x4), atol=1e-3, rtol=1e-3)

    # bf16 path (bf16 HBM traffic, f32 math in-register, (16,128) min tile).
    x3 = (jax.random.normal(jax.random.PRNGKey(0), (2, 4, 16, 16),
                            dtype=jnp.float32) * 3.0).astype(jnp.bfloat16)
    y3 = mish(x3)
    jax.block_until_ready(y3)
    assert y3.dtype == jnp.bfloat16 and y3.shape == x3.shape
    assert jnp.allclose(y3.astype(jnp.float32), _mish_ref(x3), atol=0.1, rtol=0.05)

    # Aliased-output path (input_output_aliases={0: 0}).
    x5 = jax.random.normal(jax.random.PRNGKey(0), (2, 4, 16, 16), dtype=jnp.float32) * 3.0
    y5 = mish(x5, donate_input=True)
    jax.block_until_ready(y5)
    assert jnp.allclose(y5, _mish_ref(x5), atol=1e-3, rtol=1e-3)

    print("KERNEL_OK")
</pallas_src>

<mosaic_0001>
module attributes {stable_mosaic.version = 11 : i64} {
  func.func @_mish_kernel(%arg0: i32, %arg1: memref<16x128xf32, #tpu.memory_space<vmem>>, %arg2: memref<16x128xf32, #tpu.memory_space<vmem>>) attributes {dimension_semantics = [#tpu.dimension_semantics<parallel>], iteration_bounds = array<i64: 1>, scalar_prefetch = 0 : i64, scratch_operands = 0 : i64, tpu.core_type = #tpu.core_type<tc>, window_params = [{transform_indices = @transform_0, window_bounds = array<i64: 16, 128>}, {transform_indices = @transform_1, window_bounds = array<i64: 16, 128>}]} {
    %c0 = arith.constant 0 : index
    %c0_0 = arith.constant 0 : index
    %0 = vector.load %arg1[%c0, %c0_0] : memref<16x128xf32, #tpu.memory_space<vmem>>, vector<16x128xf32>
    %cst = arith.constant 2.000000e+01 : f32
    %1 = vector.broadcast %cst : f32 to vector<16x128xf32>
    %2 = arith.minimumf %0, %1 : vector<16x128xf32>
    %3 = math.exp %2 : vector<16x128xf32>
    %cst_1 = arith.constant 2.000000e+00 : f32
    %4 = vector.broadcast %cst_1 : f32 to vector<16x128xf32>
    %5 = arith.addf %3, %4 : vector<16x128xf32>
    %6 = arith.mulf %3, %5 : vector<16x128xf32>
    %cst_2 = arith.constant 2.000000e+00 : f32
    %7 = vector.broadcast %cst_2 : f32 to vector<16x128xf32>
    %8 = arith.addf %6, %7 : vector<16x128xf32>
    %9 = tpu.reciprocal %8 {approx = true} : vector<16x128xf32> -> vector<16x128xf32>
    %10 = arith.mulf %8, %9 : vector<16x128xf32>
    %cst_3 = arith.constant 2.000000e+00 : f32
    %11 = vector.broadcast %cst_3 : f32 to vector<16x128xf32>
    %12 = arith.subf %11, %10 : vector<16x128xf32>
    %13 = arith.mulf %9, %12 : vector<16x128xf32>
    %14 = arith.mulf %0, %6 : vector<16x128xf32>
    %15 = arith.mulf %14, %13 : vector<16x128xf32>
    %c0_4 = arith.constant 0 : index
    %c0_5 = arith.constant 0 : index
    %16 = vector.load %arg2[%c0_4, %c0_5] : memref<16x128xf32, #tpu.memory_space<vmem>>, vector<16x128xf32>
    tpu.vector_store %arg2[%c0_4, %c0_5], %15 {strides = array<i32>} : memref<16x128xf32, #tpu.memory_space<vmem>>, vector<16x128xf32>,
    return
  }
  func.func @transform_0(%arg0: i32) -> (i32, i32) {
    %c0_i32 = arith.constant 0 : i32
    %c0_i32_0 = arith.constant 0 : i32
    return %arg0, %c0_i32 : i32, i32
  }
  func.func @transform_1(%arg0: i32) -> (i32, i32) {
    %c0_i32 = arith.constant 0 : i32
    %c0_i32_0 = arith.constant 0 : i32
    return %arg0, %c0_i32 : i32, i32
  }
}

</mosaic_0001>

<bundles_post_ra>
// kernel: tpu_custom_call.1
= control target key start
LH: loop header
LB: loop body
LE: loop exit
PB: predicated region body
PF: predicated region fallthrough
CT: control target
= control target key end

     0   :  { %6 = vsyncpa [#allocation3], 0  ;;  %s172_s0 = inlined_call_operand.hbm [shape: f32[16,128], index: 0, kind: input, shape index: {}]   ;;  %s173_s1 = inlined_call_operand.hbm [shape: f32[16,128], index: 1, kind: output, shape index: {}]  }
   0x1   :  { %7 = vsyncpa [#allocation4], 0  ;;  %s128_s6 = smov [#allocation2]   ;;  %s80_s10 = scalar_lea.hbm %s172_s0, 256 }
   0x2   :  { %s13_s7 = sshll.u32 %s128_s6, 4  ;;  %p81_p0 = scmp.ne.s32.totalorder %s172_s0, %s80_s10  ;;  %s14_s7 = int_to_ptr.vmem [resolvable:$true] %s13_s7 }
   0x3   :  { %p84_p1 = scmp.lt.u32.totalorder %s80_s10, %s172_s0 }
   0x5   :  { %p86_p2 = pnand %p84_p1, %p81_p0 }
   0x7   :  { %89 = shalt.err (!%p86_p2)
}
   0x8   :  { %s90_s15 = scalar_lea.vmem %s14_s7, 256  ;;  %p95_p4 = scmp.lt.s32.totalorder %s14_s7, %s14_s7 }
   0x9   :  { %p91_p3 = scmp.ne.s32.totalorder %s14_s7, %s90_s15  ;;  %p96_p5 = scmp.lt.s32.totalorder %s90_s15, %s90_s15 }
   0xb   :  { %p97_p6 = por %p96_p5, %p95_p4 }
   0xd   :  { %p98_p7 = pnand %p97_p6, %p91_p3 }
   0xf   :  { %101 = shalt.err (!%p98_p7)
}
  0x10   :  { %s129_s16 = smov 128   ;;  %s130_s17 = smov 8  }
  0x11   :  { %19 = dma.hbm_to_vmem [thread:$0]  %s172_s0, 256, %s14_s7, [#allocation3], %s129_s16, %s129_s16, %s130_s17  }
  0x12   :  { %124 = dma.done.wait [#allocation3], 256  }
  0x13   :  { %125 = vsyncadd [#allocation3], 4294967040  ;;  %v23_v0 = vld [vmem:[#allocation2] sm:$0xff]  ;;  %v24_v1 = vld [vmem:[#allocation2 + $0x8] sm:$0xff]  ;;  %s131_s0 = smov [#allocation5]  }
  0x14   :  { %v25_v2 = vmin.f32 %v23_v0, 20.0  ;;  %v26_v3 = vmin.f32 %v24_v1, 20.0  ;;  %s56_s20 = sshll.u32 %s131_s0, 4  ;;  %s57_s20 = int_to_ptr.vmem [resolvable:$true] %s56_s20 }
  0x15   :  { %s102_s21 = scalar_lea.vmem %s57_s20, 256  ;;  %p107_p9 = scmp.lt.s32.totalorder %s57_s20, %s57_s20 }
  0x16   :  { %v27_v4 = vmul.f32 1.442695, %v25_v2  ;;  %v29_v5 = vmul.f32 1.442695, %v26_v3  ;;  %p103_p8 = scmp.ne.s32.totalorder %s57_s20, %s102_s21  ;;  %p108_p10 = scmp.lt.s32.totalorder %s102_s21, %s102_s21 }
  0x18   :  { %72 = vpow2.f32 %v27_v4  ;;  %p109_p11 = por %p108_p10, %p107_p9 }
  0x19   :  { %74 = vpow2.f32 %v29_v5 }
  0x1a   :  { %p110_p12 = pnand %p109_p11, %p103_p8 }
  0x22   :  { %v73_v6 = vpop.eup %72 }
  0x23   :  { %v75_v7 = vpop.eup %74  ;;  %v31_v8 = vadd.f32 2.0, %v73_v6 }
  0x24   :  { %v32_v9 = vadd.f32 2.0, %v75_v7 }
  0x25   :  { %v33_v10 = vmul.f32 %v73_v6, %v31_v8 }
  0x26   :  { %v34_v11 = vmul.f32 %v75_v7, %v32_v9 }
  0x27   :  { %v35_v12 = vadd.f32 2.0, %v33_v10  ;;  %v45_v19 = vmul.f32 %v33_v10, %v23_v0 }
  0x28   :  { %v36_v13 = vadd.f32 2.0, %v34_v11  ;;  %v46_v21 = vmul.f32 %v34_v11, %v24_v1 }
  0x29   :  { %76 = vrcp.f32 %v35_v12 }
  0x2a   :  { %78 = vrcp.f32 %v36_v13 }
  0x33   :  { %v77_v14 = vpop.eup %76 }
  0x34   :  { %v79_v15 = vpop.eup %78  ;;  %v39_v16 = vmul.f32 %v77_v14, %v35_v12 }
  0x35   :  { %v40_v17 = vmul.f32 %v79_v15, %v36_v13 }
  0x36   :  { %v41_v18 = vsub.f32 2.0, %v39_v16 }
  0x37   :  { %v42_v20 = vsub.f32 2.0, %v40_v17 }
  0x38   :  { %v43_v22 = vmul.f32 %v77_v14, %v41_v18 }
  0x39   :  { %v44_v23 = vmul.f32 %v79_v15, %v42_v20 }
  0x3a   :  { %v47_v24 = vmul.f32 %v45_v19, %v43_v22 }
  0x3b   :  { %v48_v25 = vmul.f32 %v46_v21, %v44_v23 }
  0x3c   :  { %49 = vst [vmem:[#allocation5] sm:$0xff] %v47_v24 }
  0x3d   :  { %50 = vst [vmem:[#allocation5 + $0x8] sm:$0xff] %v48_v25 }
  0x3e   :  { %113 = shalt.err (!%p110_p12)
}
  0x3f   :  { %s114_s24 = scalar_lea.hbm %s173_s1, 256 }
  0x40   :  { %p115_p13 = scmp.ne.s32.totalorder %s173_s1, %s114_s24  ;;  %p118_p0 = scmp.lt.u32.totalorder %s114_s24, %s173_s1 }
  0x42   :  { %p120_p1 = pnand %p118_p0, %p115_p13 }
  0x44   :  { %123 = shalt.err (!%p120_p1)
}
  0x45   :  { %62 = dma.vmem_to_hbm [thread:$0]  %s57_s20, 256, %s173_s1, [#allocation4], %s129_s16, %s129_s16, %s130_s17  }
  0x46   :  { %126 = dma.done.wait [#allocation4], 256  }
  0x47   :  { %127 = vsyncadd [#allocation4], 4294967040 }
  0x48   :  { %66 = vsyncpa [#allocation3], 1 }
  0x49   :  { %67 = vsyncpa [#allocation4], 1 }

</bundles_post_ra>
